<compile_context>
chip_gen: v6e
topology: v6e:2x2x1
jax: 0.10.0
libtpu: 0.0.40
codegen_flags: <defaults>
</compile_context>

<pallas_src>
import functools
import math

import jax
import jax.numpy as jnp
from jax.experimental import pallas as pl
from jax.experimental.pallas import tpu as pltpu


def gcn_kernel(x_ref, wg1_ref, bg1_ref, wg2_ref, bg2_ref,
               wf1_ref, bf1_ref, wf2_ref, bf2_ref, wf3_ref, bf3_ref,
               out_ref, *, compute_dtype):
    """Whole forward pass as 5 chained matmuls on one (TB, .) batch slab."""
    cd = compute_dtype

    # gc1 (adjacency pre-folded into the weight): (TB, N*nfeat) @ (N*nfeat, N*nhid)
    h = jnp.dot(x_ref[...], wg1_ref[...], preferred_element_type=jnp.float32)
    h = jnp.maximum(h + bg1_ref[...], 0.0)
    # TODO(synk): F.dropout — identity in eval/inference mode; not applied here.

    # gc2: (TB, N*nhid) @ (N*nhid, N*2h)
    h = jnp.dot(h.astype(cd), wg2_ref[...], preferred_element_type=jnp.float32)
    h = jnp.maximum(h + bg2_ref[...], 0.0)

    # fc1 on the node-flattened features: (TB, N*2h) @ (N*2h, 256)
    h = jnp.dot(h.astype(cd), wf1_ref[...], preferred_element_type=jnp.float32)
    h = jnp.maximum(h + bf1_ref[...], 0.0)

    # fc2: (TB, 256) @ (256, 64)
    h = jnp.dot(h.astype(cd), wf2_ref[...], preferred_element_type=jnp.float32)
    h = jnp.maximum(h + bf2_ref[...], 0.0)

    # fc3 (no activation); output zero-padded to 128 lanes -> unmasked store.
    out_ref[...] = (jnp.dot(h.astype(cd), wf3_ref[...],
                            preferred_element_type=jnp.float32)
                    + bf3_ref[...])


def _choose_tile(batch):
    """Whole batch for small sizes; otherwise a large (multiple-of-8) tile
    capped at 1024 rows that still leaves >= 2 grid steps so both v7x
    TensorCores get work through the 'parallel' grid axis."""
    if batch < 256:
        return batch
    half = (batch // 2) // 8 * 8
    return max(8, min(1024, half))


def gcn_forward(x, adj, params, *, tile_b=None, compute_dtype=jnp.bfloat16):
    """x: (B, N, nfeat), adj: (N, N). Returns (B, 8)."""
    B, N, nfeat = x.shape
    nhid = params["w1"].shape[1]
    two_h = 2 * nhid
    OUT_PAD = 128   # pad the 8-wide output to a full lane width

    if tile_b is None:
        tile_b = _choose_tile(B)
    grid_b = pl.cdiv(B, tile_b)
    b_pad = grid_b * tile_b

    # Node-major flatten (matches torch's x.view(B, 1, -1) order): (B, N*nfeat).
    x_flat = x.reshape(B, N * nfeat).astype(compute_dtype)
    if b_pad != B:
        x_flat = jnp.pad(x_flat, ((0, b_pad - B), (0, 0)))

    # ---- fold adjacency into the GC weights via Kronecker products ---------
    # h_flat[:, i*H + k] = sum_{j,f} x_flat[:, j*F + f] * adj[i, j] * W[f, k]
    #                    = (x_flat @ kron(adj.T, W))[:, i*H + k]
    adj_f = adj.astype(jnp.float32)
    wg1 = jnp.kron(adj_f.T, params["w1"]).astype(compute_dtype)   # (N*nfeat, N*nhid)
    bg1 = jnp.tile(params["b1"], N).reshape(1, N * nhid).astype(jnp.float32)
    wg2 = jnp.kron(adj_f.T, params["w2"]).astype(compute_dtype)   # (N*nhid, N*2h)
    bg2 = jnp.tile(params["b2"], N).reshape(1, N * two_h).astype(jnp.float32)

    wf1 = params["wf1"].T.astype(compute_dtype)                   # (N*2h, 256)
    bf1 = params["bf1"].reshape(1, 256).astype(jnp.float32)
    wf2 = params["wf2"].T.astype(compute_dtype)                   # (256, 64)
    bf2 = params["bf2"].reshape(1, 64).astype(jnp.float32)
    # fc3 zero-padded to 128 output lanes (lane-dense final store).
    wf3 = jnp.zeros((64, OUT_PAD), jnp.float32).at[:, :8].set(params["wf3"].T)
    wf3 = wf3.astype(compute_dtype)
    bf3 = jnp.zeros((1, OUT_PAD), jnp.float32).at[:, :8].set(
        params["bf3"].reshape(1, 8))

    def full_spec(a):
        nd = a.ndim
        return pl.BlockSpec(a.shape, lambda b, _nd=nd: (0,) * _nd)

    in_specs = [
        pl.BlockSpec((tile_b, N * nfeat), lambda b: (b, 0)),      # x batch slab
        full_spec(wg1), full_spec(bg1),
        full_spec(wg2), full_spec(bg2),
        full_spec(wf1), full_spec(bf1),
        full_spec(wf2), full_spec(bf2),
        full_spec(wf3), full_spec(bf3),
    ]
    out_spec = pl.BlockSpec((tile_b, OUT_PAD), lambda b: (b, 0))

    out = pl.pallas_call(
        functools.partial(gcn_kernel, compute_dtype=compute_dtype),
        grid=(grid_b,),
        in_specs=in_specs,
        out_specs=out_spec,
        out_shape=jax.ShapeDtypeStruct((b_pad, OUT_PAD), jnp.float32),
        compiler_params=pltpu.CompilerParams(
            dimension_semantics=("parallel",)),
    )(x_flat, wg1, bg1, wg2, bg2, wf1, bf1, wf2, bf2, wf3, bf3)
    return out[:B, :8]


def init_params(key, nfeat, nhid, num_nodes):
    """Deterministic synthetic parameters (shapes match the PyTorch module)."""
    ks = jax.random.split(key, 10)
    two_h = 2 * nhid

    def u(k, shape, bound):
        return jax.random.uniform(k, shape, jnp.float32, -bound, bound)

    s1 = 1.0 / math.sqrt(nhid)
    s2 = 1.0 / math.sqrt(two_h)
    sf1 = 1.0 / math.sqrt(two_h * num_nodes)
    sf2 = 1.0 / math.sqrt(256)
    sf3 = 1.0 / math.sqrt(64)

    return {
        "w1": u(ks[0], (nfeat, nhid), s1), "b1": u(ks[1], (nhid,), s1),
        "w2": u(ks[2], (nhid, two_h), s2), "b2": u(ks[3], (two_h,), s2),
        # nn.Linear weights stored as (out_features, in_features)
        "wf1": u(ks[4], (256, two_h * num_nodes), sf1), "bf1": u(ks[5], (256,), sf1),
        "wf2": u(ks[6], (64, 256), sf2), "bf2": u(ks[7], (64,), sf2),
        "wf3": u(ks[8], (8, 64), sf3), "bf3": u(ks[9], (8,), sf3),
    }


def gcn_reference(x, adj, p):
    """Pure-JAX reference mirroring the PyTorch forward (eval mode)."""
    h1 = jax.nn.relu(jnp.einsum("nm,bmh->bnh", adj, x @ p["w1"]) + p["b1"])
    h2 = jax.nn.relu(jnp.einsum("nm,bmh->bnh", adj, h1 @ p["w2"]) + p["b2"])
    flat = h2.reshape(x.shape[0], -1)
    h3 = jax.nn.relu(flat @ p["wf1"].T + p["bf1"])
    h4 = jax.nn.relu(h3 @ p["wf2"].T + p["bf2"])
    return h4 @ p["wf3"].T + p["bf3"]


if __name__ == "__main__":
    B, N, NFEAT, NHID = 2, 4, 16, 32   # fc1 in_features = nhid*2*4 => N must be 4

    key = jax.random.PRNGKey(0)
    kx, kadj, kp = jax.random.split(key, 3)

    x = jax.random.normal(kx, (B, N, NFEAT), jnp.float32)
    # Symmetric, row-normalized adjacency with self-loops (typical GCN input).
    a = jax.random.uniform(kadj, (N, N), jnp.float32)
    a = (a + a.T) * 0.5 + jnp.eye(N, dtype=jnp.float32)
    adj = a / jnp.sum(a, axis=1, keepdims=True)

    params = init_params(kp, NFEAT, NHID, N)
    ref = gcn_reference(x, adj, params)

    # f32 path: validates the kron-folded math exactly.
    out_f32 = jax.block_until_ready(
        gcn_forward(x, adj, params, compute_dtype=jnp.float32))
    assert out_f32.shape == (B, 8), out_f32.shape
    assert jnp.allclose(out_f32, ref, atol=1e-4, rtol=1e-4), (
        float(jnp.max(jnp.abs(out_f32 - ref))))

    # bf16 (production) path: MXU-native operands, f32 accumulation.
    out_bf16 = jax.block_until_ready(gcn_forward(x, adj, params))
    assert out_bf16.shape == (B, 8), out_bf16.shape
    assert jnp.allclose(out_bf16, ref, atol=3e-2, rtol=3e-2), (
        float(jnp.max(jnp.abs(out_bf16 - ref))))

    print("KERNEL_OK")
</pallas_src>

<mosaic_0001>
module attributes {stable_mosaic.version = 11 : i64} {
  func.func @gcn_kernel(%arg0: i32, %arg1: memref<2x64xf32, #tpu.memory_space<vmem>>, %arg2: memref<64x128xf32, #tpu.memory_space<vmem>>, %arg3: memref<1x128xf32, #tpu.memory_space<vmem>>, %arg4: memref<128x256xf32, #tpu.memory_space<vmem>>, %arg5: memref<1x256xf32, #tpu.memory_space<vmem>>, %arg6: memref<256x256xf32, #tpu.memory_space<vmem>>, %arg7: memref<1x256xf32, #tpu.memory_space<vmem>>, %arg8: memref<256x64xf32, #tpu.memory_space<vmem>>, %arg9: memref<1x64xf32, #tpu.memory_space<vmem>>, %arg10: memref<64x128xf32, #tpu.memory_space<vmem>>, %arg11: memref<1x128xf32, #tpu.memory_space<vmem>>, %arg12: memref<2x128xf32, #tpu.memory_space<vmem>>) attributes {dimension_semantics = [#tpu.dimension_semantics<parallel>], iteration_bounds = array<i64: 1>, scalar_prefetch = 0 : i64, scratch_operands = 0 : i64, tpu.core_type = #tpu.core_type<tc>, window_params = [{transform_indices = @transform_0, window_bounds = array<i64: 2, 64>}, {pipeline_mode = #tpu.pipeline_mode<synchronous>, transform_indices = @transform_1, window_bounds = array<i64: 64, 128>}, {pipeline_mode = #tpu.pipeline_mode<synchronous>, transform_indices = @transform_2, window_bounds = array<i64: 1, 128>}, {pipeline_mode = #tpu.pipeline_mode<synchronous>, transform_indices = @transform_3, window_bounds = array<i64: 128, 256>}, {pipeline_mode = #tpu.pipeline_mode<synchronous>, transform_indices = @transform_4, window_bounds = array<i64: 1, 256>}, {pipeline_mode = #tpu.pipeline_mode<synchronous>, transform_indices = @transform_5, window_bounds = array<i64: 256, 256>}, {pipeline_mode = #tpu.pipeline_mode<synchronous>, transform_indices = @transform_6, window_bounds = array<i64: 1, 256>}, {pipeline_mode = #tpu.pipeline_mode<synchronous>, transform_indices = @transform_7, window_bounds = array<i64: 256, 64>}, {pipeline_mode = #tpu.pipeline_mode<synchronous>, transform_indices = @transform_8, window_bounds = array<i64: 1, 64>}, {pipeline_mode = #tpu.pipeline_mode<synchronous>, transform_indices = @transform_9, window_bounds = array<i64: 64, 128>}, {pipeline_mode = #tpu.pipeline_mode<synchronous>, transform_indices = @transform_10, window_bounds = array<i64: 1, 128>}, {transform_indices = @transform_11, window_bounds = array<i64: 2, 128>}]} {
    %c0 = arith.constant 0 : index
    %c0_0 = arith.constant 0 : index
    %0 = vector.load %arg1[%c0, %c0_0] : memref<2x64xf32, #tpu.memory_space<vmem>>, vector<2x64xf32>
    %c0_1 = arith.constant 0 : index
    %c0_2 = arith.constant 0 : index
    %1 = vector.load %arg2[%c0_1, %c0_2] : memref<64x128xf32, #tpu.memory_space<vmem>>, vector<64x128xf32>
    %cst = arith.constant dense<0.000000e+00> : vector<2x128xf32>
    %2 = tpu.matmul %0, %1, %cst {dimension_numbers = #tpu.dot_dimension_numbers<[1], [0], [0], [1], [0, 0, 1, 1], [], []>} : vector<2x64xf32>, vector<64x128xf32>, vector<2x128xf32> -> vector<2x128xf32>
    %c0_3 = arith.constant 0 : index
    %c0_4 = arith.constant 0 : index
    %3 = vector.load %arg3[%c0_3, %c0_4] : memref<1x128xf32, #tpu.memory_space<vmem>>, vector<1x128xf32>
    %4 = vector.broadcast %3 : vector<1x128xf32> to vector<2x128xf32>
    %5 = arith.addf %2, %4 : vector<2x128xf32>
    %cst_5 = arith.constant 0.000000e+00 : f32
    %6 = vector.broadcast %cst_5 : f32 to vector<2x128xf32>
    %7 = arith.maximumf %5, %6 : vector<2x128xf32>
    %c0_6 = arith.constant 0 : index
    %c0_7 = arith.constant 0 : index
    %8 = vector.load %arg4[%c0_6, %c0_7] : memref<128x256xf32, #tpu.memory_space<vmem>>, vector<128x256xf32>
    %cst_8 = arith.constant dense<0.000000e+00> : vector<2x256xf32>
    %9 = tpu.matmul %7, %8, %cst_8 {dimension_numbers = #tpu.dot_dimension_numbers<[1], [0], [0], [1], [0, 0, 1, 1], [], []>} : vector<2x128xf32>, vector<128x256xf32>, vector<2x256xf32> -> vector<2x256xf32>
    %c0_9 = arith.constant 0 : index
    %c0_10 = arith.constant 0 : index
    %10 = vector.load %arg5[%c0_9, %c0_10] : memref<1x256xf32, #tpu.memory_space<vmem>>, vector<1x256xf32>
    %11 = vector.broadcast %10 : vector<1x256xf32> to vector<2x256xf32>
    %12 = arith.addf %9, %11 : vector<2x256xf32>
    %cst_11 = arith.constant 0.000000e+00 : f32
    %13 = vector.broadcast %cst_11 : f32 to vector<2x256xf32>
    %14 = arith.maximumf %12, %13 : vector<2x256xf32>
    %c0_12 = arith.constant 0 : index
    %c0_13 = arith.constant 0 : index
    %15 = vector.load %arg6[%c0_12, %c0_13] : memref<256x256xf32, #tpu.memory_space<vmem>>, vector<256x256xf32>
    %cst_14 = arith.constant dense<0.000000e+00> : vector<2x256xf32>
    %16 = tpu.matmul %14, %15, %cst_14 {dimension_numbers = #tpu.dot_dimension_numbers<[1], [0], [0], [1], [0, 0, 1, 1], [], []>} : vector<2x256xf32>, vector<256x256xf32>, vector<2x256xf32> -> vector<2x256xf32>
    %c0_15 = arith.constant 0 : index
    %c0_16 = arith.constant 0 : index
    %17 = vector.load %arg7[%c0_15, %c0_16] : memref<1x256xf32, #tpu.memory_space<vmem>>, vector<1x256xf32>
    %18 = vector.broadcast %17 : vector<1x256xf32> to vector<2x256xf32>
    %19 = arith.addf %16, %18 : vector<2x256xf32>
    %cst_17 = arith.constant 0.000000e+00 : f32
    %20 = vector.broadcast %cst_17 : f32 to vector<2x256xf32>
    %21 = arith.maximumf %19, %20 : vector<2x256xf32>
    %c0_18 = arith.constant 0 : index
    %c0_19 = arith.constant 0 : index
    %22 = vector.load %arg8[%c0_18, %c0_19] : memref<256x64xf32, #tpu.memory_space<vmem>>, vector<256x64xf32>
    %cst_20 = arith.constant dense<0.000000e+00> : vector<2x64xf32>
    %23 = tpu.matmul %21, %22, %cst_20 {dimension_numbers = #tpu.dot_dimension_numbers<[1], [0], [0], [1], [0, 0, 1, 1], [], []>} : vector<2x256xf32>, vector<256x64xf32>, vector<2x64xf32> -> vector<2x64xf32>
    %c0_21 = arith.constant 0 : index
    %c0_22 = arith.constant 0 : index
    %24 = vector.load %arg9[%c0_21, %c0_22] : memref<1x64xf32, #tpu.memory_space<vmem>>, vector<1x64xf32>
    %25 = vector.broadcast %24 : vector<1x64xf32> to vector<2x64xf32>
    %26 = arith.addf %23, %25 : vector<2x64xf32>
    %cst_23 = arith.constant 0.000000e+00 : f32
    %27 = vector.broadcast %cst_23 : f32 to vector<2x64xf32>
    %28 = arith.maximumf %26, %27 : vector<2x64xf32>
    %c0_24 = arith.constant 0 : index
    %c0_25 = arith.constant 0 : index
    %29 = vector.load %arg10[%c0_24, %c0_25] : memref<64x128xf32, #tpu.memory_space<vmem>>, vector<64x128xf32>
    %cst_26 = arith.constant dense<0.000000e+00> : vector<2x128xf32>
    %30 = tpu.matmul %28, %29, %cst_26 {dimension_numbers = #tpu.dot_dimension_numbers<[1], [0], [0], [1], [0, 0, 1, 1], [], []>} : vector<2x64xf32>, vector<64x128xf32>, vector<2x128xf32> -> vector<2x128xf32>
    %c0_27 = arith.constant 0 : index
    %c0_28 = arith.constant 0 : index
    %31 = vector.load %arg11[%c0_27, %c0_28] : memref<1x128xf32, #tpu.memory_space<vmem>>, vector<1x128xf32>
    %32 = vector.broadcast %31 : vector<1x128xf32> to vector<2x128xf32>
    %33 = arith.addf %30, %32 : vector<2x128xf32>
    %c0_29 = arith.constant 0 : index
    %c0_30 = arith.constant 0 : index
    %34 = vector.load %arg12[%c0_29, %c0_30] : memref<2x128xf32, #tpu.memory_space<vmem>>, vector<2x128xf32>
    tpu.vector_store %arg12[%c0_29, %c0_30], %33 {strides = array<i32>} : memref<2x128xf32, #tpu.memory_space<vmem>>, vector<2x128xf32>,
    return
  }
  func.func @transform_0(%arg0: i32) -> (i32, i32) {
    %c0_i32 = arith.constant 0 : i32
    %c0_i32_0 = arith.constant 0 : i32
    return %arg0, %c0_i32 : i32, i32
  }
  func.func @transform_1(%arg0: i32) -> (i32, i32) {
    %c0_i32 = arith.constant 0 : i32
    %c0_i32_0 = arith.constant 0 : i32
    %c0_i32_1 = arith.constant 0 : i32
    return %c0_i32, %c0_i32_0 : i32, i32
  }
  func.func @transform_2(%arg0: i32) -> (i32, i32) {
    %c0_i32 = arith.constant 0 : i32
    %c0_i32_0 = arith.constant 0 : i32
    %c0_i32_1 = arith.constant 0 : i32
    return %c0_i32, %c0_i32_0 : i32, i32
  }
  func.func @transform_3(%arg0: i32) -> (i32, i32) {
    %c0_i32 = arith.constant 0 : i32
    %c0_i32_0 = arith.constant 0 : i32
    %c0_i32_1 = arith.constant 0 : i32
    return %c0_i32, %c0_i32_0 : i32, i32
  }
  func.func @transform_4(%arg0: i32) -> (i32, i32) {
    %c0_i32 = arith.constant 0 : i32
    %c0_i32_0 = arith.constant 0 : i32
    %c0_i32_1 = arith.constant 0 : i32
    return %c0_i32, %c0_i32_0 : i32, i32
  }
  func.func @transform_5(%arg0: i32) -> (i32, i32) {
    %c0_i32 = arith.constant 0 : i32
    %c0_i32_0 = arith.constant 0 : i32
    %c0_i32_1 = arith.constant 0 : i32
    return %c0_i32, %c0_i32_0 : i32, i32
  }
  func.func @transform_6(%arg0: i32) -> (i32, i32) {
    %c0_i32 = arith.constant 0 : i32
    %c0_i32_0 = arith.constant 0 : i32
    %c0_i32_1 = arith.constant 0 : i32
    return %c0_i32, %c0_i32_0 : i32, i32
  }
  func.func @transform_7(%arg0: i32) -> (i32, i32) {
    %c0_i32 = arith.constant 0 : i32
    %c0_i32_0 = arith.constant 0 : i32
    %c0_i32_1 = arith.constant 0 : i32
    return %c0_i32, %c0_i32_0 : i32, i32
  }
  func.func @transform_8(%arg0: i32) -> (i32, i32) {
    %c0_i32 = arith.constant 0 : i32
    %c0_i32_0 = arith.constant 0 : i32
    %c0_i32_1 = arith.constant 0 : i32
    return %c0_i32, %c0_i32_0 : i32, i32
  }
  func.func @transform_9(%arg0: i32) -> (i32, i32) {
    %c0_i32 = arith.constant 0 : i32
    %c0_i32_0 = arith.constant 0 : i32
    %c0_i32_1 = arith.constant 0 : i32
    return %c0_i32, %c0_i32_0 : i32, i32
  }
  func.func @transform_10(%arg0: i32) -> (i32, i32) {
    %c0_i32 = arith.constant 0 : i32
    %c0_i32_0 = arith.constant 0 : i32
    %c0_i32_1 = arith.constant 0 : i32
    return %c0_i32, %c0_i32_0 : i32, i32
  }
  func.func @transform_11(%arg0: i32) -> (i32, i32) {
    %c0_i32 = arith.constant 0 : i32
    %c0_i32_0 = arith.constant 0 : i32
    return %arg0, %c0_i32 : i32, i32
  }
}

</mosaic_0001>

<bundles_post_ra>
// kernel: tpu_custom_call.1
= control target key start
LH: loop header
LB: loop body
LE: loop exit
PB: predicated region body
PF: predicated region fallthrough
CT: control target
= control target key end

     0   :  { %16 = vsyncpa [#allocation3], 0  ;;  %s1123_s0 = inlined_call_operand.vmem [shape: f32[2,64], index: 0, kind: input, shape index: {}]   ;;  %s1124_s1 = inlined_call_operand.vmem [shape: f32[64,128], index: 1, kind: input, shape index: {}]   ;;  %s1125_s2 = inlined_call_operand.vmem [shape: f32[1,128], index: 2, kind: input, shape index: {}]   ;;  %s1126_s3 = inlined_call_operand.vmem [shape: f32[128,256], index: 3, kind: input, shape index: {}]   ;;  %s1127_s4 = inlined_call_operand.vmem [shape: f32[1,256], index: 4, kind: input, shape index: {}]   ;;  %s1128_s5 = inlined_call_operand.hbm [shape: f32[256,256], index: 5, kind: input, shape index: {}]   ;;  %s1129_s6 = inlined_call_operand.vmem [shape: f32[1,256], index: 6, kind: input, shape index: {}]   ;;  %s1130_s7 = inlined_call_operand.vmem [shape: f32[256,64], index: 7, kind: input, shape index: {}]   ;;  %s1131_s8 = inlined_call_operand.vmem [shape: f32[1,64], index: 8, kind: input, shape index: {}]   ;;  %s1132_s9 = inlined_call_operand.vmem [shape: f32[64,128], index: 9, kind: input, shape index: {}]   ;;  %s1133_s10 = inlined_call_operand.vmem [shape: f32[1,128], index: 10, kind: input, shape index: {}]   ;;  %s1134_s11 = inlined_call_operand.hbm [shape: f32[2,128], index: 11, kind: output, shape index: {}]  }
   0x1   :  { %17 = vsyncpa [#allocation4], 0  ;;  %s770_s17 = smov [#allocation2]  }
   0x2   :  { %s33_s18 = sshll.u32 %s770_s17, 4  ;;  %s34_s18 = int_to_ptr.vmem [resolvable:$true] %s33_s18 }
   0x3   :  { %s734_s19 = scalar_lea.vmem %s34_s18, 8192  ;;  %p739_p1 = scmp.lt.s32.totalorder %s34_s18, %s34_s18 }
   0x4   :  { %p735_p0 = scmp.ne.s32.totalorder %s34_s18, %s734_s19  ;;  %p740_p2 = scmp.lt.s32.totalorder %s734_s19, %s734_s19 }
   0x6   :  { %p741_p3 = por %p740_p2, %p739_p1 }
   0x8   :  { %p742_p4 = pnand %p741_p3, %p735_p0 }
   0xa   :  { %745 = shalt.err (!%p742_p4)
}
   0xb   :  { %s771_s20 = smov 256   ;;  %s772_s21 = smov 16  }
   0xc   :  { %39 = dma.hbm_to_vmem [thread:$0]  %s1128_s5, 8192, %s34_s18, [#allocation3], %s771_s20, %s771_s20, %s772_s21  }
   0xd   :  { %766 = dma.done.wait [#allocation3], 8192  }
   0xe   :  { %767 = vsyncadd [#allocation3], 4294959104  ;;  %v773_v0 = vmov 0.0   ;;  %vm774_vm0 = vmmov 0   ;;  %v61_v1 = vld [vmem:[%s1124_s1 + $0x38] sm:$0xff]  ;;  %v60_v2 = vld [vmem:[%s1124_s1 + $0x30] sm:$0xff] }
   0xf   :  { %682 = vmatprep.subr.mxu0 %v773_v0  ;;  %698 = vmatprep.mubr.msk.f32.mxu0 %vm774_vm0, %v773_v0  ;;  %v59_v3 = vld [vmem:[%s1124_s1 + $0x28] sm:$0xff]  ;;  %v175_v4 = vld [vmem:[%s1126_s3 + $0xf8] sm:$0xff]  ;;  %v174_v5 = vld [vmem:[%s1126_s3 + $0xf0] sm:$0xff]  ;;  %vm69_vm1 = vcmask 523264   ;;  %s775_s12 = smov [#allocation5]  }
  0x10   :  { %252 = vmatprep.mubr.f32.mxu1 %v773_v0  ;;  %683 = vmatpush3.msra.mxu0 %v61_v1  ;;  %v173_v6 = vld [vmem:[%s1126_s3 + $0xe8] sm:$0xff]  ;;  %v58_v7 = vld [vmem:[%s1124_s1 + $0x20] sm:$0xff]  ;;  %v171_v9 = vld [vmem:[%s1126_s3 + $0xd8] sm:$0xff]  ;;  %s615_s13 = sshll.u32 %s775_s12, 4  ;;  %s616_s13 = int_to_ptr.vmem [resolvable:$true] %s615_s13 }
  0x11   :  { %684 = vmatprep.subr.mxu0 %v773_v0  ;;  %188 = vmatprep.subr.mxu1 %v175_v4  ;;  %v172_v8 = vld [vmem:[%s1126_s3 + $0xe0] sm:$0xff]  ;;  %v57_v10 = vld [vmem:[%s1124_s1 + $0x18] sm:$0xff]  ;;  %v170_v11 = vld [vmem:[%s1126_s3 + $0xd0] sm:$0xff]  ;;  %p751_p6 = scmp.lt.s32.totalorder %s616_s13, %s616_s13 }
  0x12   :  { %685 = vmatpush3.msra.mxu0 %v60_v2  ;;  %189 = vmatpush1.msra.mxu1 %v174_v5  ;;  %v169_v12 = vld [vmem:[%s1126_s3 + $0xc8] sm:$0xff]  ;;  %v56_v13 = vld [vmem:[%s1124_s1 + $0x10] sm:$0xff]  ;;  %v168_v14 = vld [vmem:[%s1126_s3 + $0xc0] sm:$0xff] }
  0x13   :  { %686 = vmatprep.subr.mxu0 %v773_v0  ;;  %190 = vmatprep.subr.mxu1 %v173_v6  ;;  %v167_v15 = vld [vmem:[%s1126_s3 + $0xb8] sm:$0xff]  ;;  %v55_v16 = vld [vmem:[%s1124_s1 + $0x8] sm:$0xff]  ;;  %v166_v17 = vld [vmem:[%s1126_s3 + $0xb0] sm:$0xff] }
  0x14   :  { %687 = vmatpush3.msra.mxu0 %v59_v3  ;;  %191 = vmatpush1.msra.mxu1 %v172_v8  ;;  %v165_v18 = vld [vmem:[%s1126_s3 + $0xa8] sm:$0xff]  ;;  %v54_v19 = vld [vmem:[%s1124_s1] sm:$0xff]  ;;  %v163_v22 = vld [vmem:[%s1126_s3 + $0x98] sm:$0xff] }
  0x15   :  { %688 = vmatprep.subr.mxu0 %v773_v0  ;;  %192 = vmatprep.subr.mxu1 %v171_v9  ;;  %v164_v20 = vld [vmem:[%s1126_s3 + $0xa0] sm:$0xff]  ;;  %v162_v23 = vld [vmem:[%s1126_s3 + $0x90] sm:$0xff]  ;;  %v161_v24 = vld [vmem:[%s1126_s3 + $0x88] sm:$0xff] }
  0x16   :  { %689 = vmatpush3.msra.mxu0 %v58_v7  ;;  %193 = vmatpush1.msra.mxu1 %v170_v11  ;;  %v53_v21 = vld [vmem:[%s1123_s0] sm:$0x3]  ;;  %v159_v26 = vld [vmem:[%s1126_s3 + $0x78] sm:$0xff]  ;;  %v158_v27 = vld [vmem:[%s1126_s3 + $0x70] sm:$0xff] }
  0x17   :  { %690 = vmatprep.subr.mxu0 %v773_v0  ;;  %194 = vmatprep.subr.mxu1 %v169_v12  ;;  %v160_v25 = vld [vmem:[%s1126_s3 + $0x80] sm:$0xff]  ;;  %v157_v28 = vld [vmem:[%s1126_s3 + $0x68] sm:$0xff]  ;;  %v155_v30 = vld [vmem:[%s1126_s3 + $0x58] sm:$0xff] }
  0x18   :  { %691 = vmatpush3.msra.mxu0 %v57_v10  ;;  %195 = vmatpush1.msra.mxu1 %v168_v14  ;;  %v156_v29 = vld [vmem:[%s1126_s3 + $0x60] sm:$0xff]  ;;  %v154_v31 = vld [vmem:[%s1126_s3 + $0x50] sm:$0xff]  ;;  %v153_v32 = vld [vmem:[%s1126_s3 + $0x48] sm:$0xff] }
  0x19   :  { %692 = vmatprep.subr.mxu0 %v773_v0  ;;  %196 = vmatprep.subr.mxu1 %v167_v15  ;;  %v152_v33 = vld [vmem:[%s1126_s3 + $0x40] sm:$0xff]  ;;  %v151_v34 = vld [vmem:[%s1126_s3 + $0x38] sm:$0xff]  ;;  %v150_v35 = vld [vmem:[%s1126_s3 + $0x30] sm:$0xff] }
  0x1a   :  { %693 = vmatpush3.msra.mxu0 %v56_v13  ;;  %197 = vmatpush1.msra.mxu1 %v166_v17  ;;  %v149_v36 = vld [vmem:[%s1126_s3 + $0x28] sm:$0xff]  ;;  %v148_v37 = vld [vmem:[%s1126_s3 + $0x20] sm:$0xff]  ;;  %v147_v38 = vld [vmem:[%s1126_s3 + $0x18] sm:$0xff] }
  0x1b   :  { %694 = vmatprep.subr.mxu0 %v773_v0  ;;  %198 = vmatprep.subr.mxu1 %v165_v18  ;;  %v146_v39 = vld [vmem:[%s1126_s3 + $0x10] sm:$0xff]  ;;  %v145_v40 = vld [vmem:[%s1126_s3 + $0x8] sm:$0xff]  ;;  %v144_v41 = vld [vmem:[%s1126_s3] sm:$0xff] }
  0x1c   :  { %695 = vmatpush3.msra.mxu0 %v55_v16  ;;  %199 = vmatpush1.msra.mxu1 %v164_v20  ;;  %v292_v42 = vld [vmem:[#allocation2 + $0xf8] sm:$0xff]  ;;  %v291_v43 = vld [vmem:[#allocation2 + $0xf0] sm:$0xff]  ;;  %v290_v44 = vld [vmem:[#allocation2 + $0xe8] sm:$0xff] }
  0x1d   :  { %696 = vmatprep.subr.mxu0 %v773_v0  ;;  %200 = vmatprep.subr.mxu1 %v163_v22  ;;  %v289_v45 = vld [vmem:[#allocation2 + $0xe0] sm:$0xff]  ;;  %v288_v46 = vld [vmem:[#allocation2 + $0xd8] sm:$0xff]  ;;  %v287_v47 = vld [vmem:[#allocation2 + $0xd0] sm:$0xff] }
  0x1e   :  { %697 = vmatpush3.msra.mxu0 %v54_v19  ;;  %201 = vmatpush1.msra.mxu1 %v162_v23  ;;  %v286_v48 = vld [vmem:[#allocation2 + $0xc8] sm:$0xff]  ;;  %v285_v49 = vld [vmem:[#allocation2 + $0xc0] sm:$0xff]  ;;  %v284_v50 = vld [vmem:[#allocation2 + $0xb8] sm:$0xff] }
  0x1f   :  { %699 = vmatmul.mubr.msk.f32.vlgmr.msra.gmra.mxu0 %vm69_vm1, %v53_v21  ;;  %202 = vmatprep.subr.mxu1 %v161_v24  ;;  %v283_v51 = vld [vmem:[#allocation2 + $0xb0] sm:$0xff]  ;;  %v282_v52 = vld [vmem:[#allocation2 + $0xa8] sm:$0xff]  ;;  %v281_v53 = vld [vmem:[#allocation2 + $0xa0] sm:$0xff] }
  0x20   :  { %203 = vmatpush1.msra.mxu1 %v160_v25  ;;  %337 = vmatprep.subr.mxu0 %v292_v42  ;;  %v280_v54 = vld [vmem:[#allocation2 + $0x98] sm:$0xff]  ;;  %v279_v55 = vld [vmem:[#allocation2 + $0x90] sm:$0xff]  ;;  %v278_v56 = vld [vmem:[#allocation2 + $0x88] sm:$0xff] }
  0x21   :  { %204 = vmatprep.subr.mxu1 %v159_v26  ;;  %338 = vmatpush1.msra.mxu0 %v291_v43  ;;  %v277_v57 = vld [vmem:[#allocation2 + $0x80] sm:$0xff]  ;;  %v276_v58 = vld [vmem:[#allocation2 + $0x78] sm:$0xff]  ;;  %v275_v59 = vld [vmem:[#allocation2 + $0x70] sm:$0xff] }
  0x22   :  { %205 = vmatpush1.msra.mxu1 %v158_v27  ;;  %339 = vmatprep.subr.mxu0 %v290_v44  ;;  %v274_v60 = vld [vmem:[#allocation2 + $0x68] sm:$0xff]  ;;  %v273_v61 = vld [vmem:[#allocation2 + $0x60] sm:$0xff]  ;;  %v272_v62 = vld [vmem:[#allocation2 + $0x58] sm:$0xff] }
  0x23   :  { %206 = vmatprep.subr.mxu1 %v157_v28  ;;  %340 = vmatpush1.msra.mxu0 %v289_v45  ;;  %v271_v63 = vld [vmem:[#allocation2 + $0x50] sm:$0xff]  ;;  %v270_v1 = vld [vmem:[#allocation2 + $0x48] sm:$0xff]  ;;  %v269_v2 = vld [vmem:[#allocation2 + $0x40] sm:$0xff] }
  0x24   :  { %207 = vmatpush1.msra.mxu1 %v156_v29  ;;  %341 = vmatprep.subr.mxu0 %v288_v46  ;;  %v268_v3 = vld [vmem:[#allocation2 + $0x38] sm:$0xff]  ;;  %v267_v4 = vld [vmem:[#allocation2 + $0x30] sm:$0xff]  ;;  %v266_v5 = vld [vmem:[#allocation2 + $0x28] sm:$0xff] }
  0x25   :  { %208 = vmatprep.subr.mxu1 %v155_v30  ;;  %342 = vmatpush1.msra.mxu0 %v287_v47  ;;  %v265_v6 = vld [vmem:[#allocation2 + $0x20] sm:$0xff]  ;;  %v264_v7 = vld [vmem:[#allocation2 + $0x18] sm:$0xff]  ;;  %v263_v8 = vld [vmem:[#allocation2 + $0x10] sm:$0xff] }
  0x26   :  { %209 = vmatpush1.msra.mxu1 %v154_v31  ;;  %343 = vmatprep.subr.mxu0 %v286_v48  ;;  %v262_v9 = vld [vmem:[#allocation2 + $0x8] sm:$0xff]  ;;  %v261_v10 = vld [vmem:[#allocation2] sm:$0xff]  ;;  %v324_v11 = vld [vmem:[#allocation2 + $0x1f8] sm:$0xff] }
  0x27   :  { %210 = vmatprep.subr.mxu1 %v153_v32  ;;  %344 = vmatpush1.msra.mxu0 %v285_v49  ;;  %v323_v12 = vld [vmem:[#allocation2 + $0x1f0] sm:$0xff]  ;;  %v322_v13 = vld [vmem:[#allocation2 + $0x1e8] sm:$0xff]  ;;  %v321_v14 = vld [vmem:[#allocation2 + $0x1e0] sm:$0xff] }
  0x28   :  { %211 = vmatpush1.msra.mxu1 %v152_v33  ;;  %345 = vmatprep.subr.mxu0 %v284_v50  ;;  %v320_v15 = vld [vmem:[#allocation2 + $0x1d8] sm:$0xff]  ;;  %v319_v16 = vld [vmem:[#allocation2 + $0x1d0] sm:$0xff]  ;;  %v318_v17 = vld [vmem:[#allocation2 + $0x1c8] sm:$0xff] }
  0x29   :  { %212 = vmatprep.subr.mxu1 %v151_v34  ;;  %346 = vmatpush1.msra.mxu0 %v283_v51  ;;  %v317_v18 = vld [vmem:[#allocation2 + $0x1c0] sm:$0xff]  ;;  %v316_v19 = vld [vmem:[#allocation2 + $0x1b8] sm:$0xff]  ;;  %v315_v20 = vld [vmem:[#allocation2 + $0x1b0] sm:$0xff] }
  0x2a   :  { %213 = vmatpush1.msra.mxu1 %v150_v35  ;;  %347 = vmatprep.subr.mxu0 %v282_v52  ;;  %v314_v21 = vld [vmem:[#allocation2 + $0x1a8] sm:$0xff]  ;;  %v313_v22 = vld [vmem:[#allocation2 + $0x1a0] sm:$0xff]  ;;  %v312_v23 = vld [vmem:[#allocation2 + $0x198] sm:$0xff] }
  0x2b   :  { %214 = vmatprep.subr.mxu1 %v149_v36  ;;  %348 = vmatpush1.msra.mxu0 %v281_v53  ;;  %v311_v24 = vld [vmem:[#allocation2 + $0x190] sm:$0xff]  ;;  %v310_v25 = vld [vmem:[#allocation2 + $0x188] sm:$0xff]  ;;  %v309_v26 = vld [vmem:[#allocation2 + $0x180] sm:$0xff] }
  0x2c   :  { %215 = vmatpush1.msra.mxu1 %v148_v37  ;;  %349 = vmatprep.subr.mxu0 %v280_v54  ;;  %v308_v27 = vld [vmem:[#allocation2 + $0x178] sm:$0xff]  ;;  %v307_v28 = vld [vmem:[#allocation2 + $0x170] sm:$0xff]  ;;  %v306_v29 = vld [vmem:[#allocation2 + $0x168] sm:$0xff] }
  0x2d   :  { %216 = vmatprep.subr.mxu1 %v147_v38  ;;  %350 = vmatpush1.msra.mxu0 %v279_v55  ;;  %v305_v30 = vld [vmem:[#allocation2 + $0x160] sm:$0xff]  ;;  %v304_v31 = vld [vmem:[#allocation2 + $0x158] sm:$0xff]  ;;  %v303_v32 = vld [vmem:[#allocation2 + $0x150] sm:$0xff] }
  0x2e   :  { %217 = vmatpush1.msra.mxu1 %v146_v39  ;;  %351 = vmatprep.subr.mxu0 %v278_v56  ;;  %v302_v33 = vld [vmem:[#allocation2 + $0x148] sm:$0xff]  ;;  %v301_v34 = vld [vmem:[#allocation2 + $0x140] sm:$0xff]  ;;  %v296_v44 = vld [vmem:[#allocation2 + $0x118] sm:$0xff] }
  0x2f   :  { %218 = vmatprep.subr.mxu1 %v145_v40  ;;  %352 = vmatpush1.msra.mxu0 %v277_v57  ;;  %v624_v35 = vld [vmem:[%s1125_s2] ss:$0 sm:$0xff]  ;;  %v300_v40 = vld [vmem:[#allocation2 + $0x138] sm:$0xff]  ;;  %v298_v42 = vld [vmem:[#allocation2 + $0x128] sm:$0xff] }
  0x30   :  { %219 = vmatpush1.msra.mxu1 %v144_v41  ;;  %353 = vmatprep.subr.mxu0 %v276_v58  ;;  %v299_v41 = vld [vmem:[#allocation2 + $0x130] sm:$0xff]  ;;  %v297_v43 = vld [vmem:[#allocation2 + $0x120] sm:$0xff]  ;;  %v294_v46 = vld [vmem:[#allocation2 + $0x108] sm:$0xff] }
  0x31   :  { %354 = vmatpush1.msra.mxu0 %v275_v59  ;;  %v295_v45 = vld [vmem:[#allocation2 + $0x110] sm:$0xff]  ;;  %v293_v47 = vld [vmem:[#allocation2 + $0x100] sm:$0xff]  ;;  %v441_v48 = vld [vmem:[%s1130_s7 + $0xf8] sm:$0xff] }
  0x32   :  { %355 = vmatprep.subr.mxu0 %v274_v60  ;;  %v425_v49 = vld [vmem:[%s1130_s7 + $0x78] sm:$0xff]  ;;  %v440_v50 = vld [vmem:[%s1130_s7 + $0xf0] sm:$0xff]  ;;  %638 = vmatprep.subr.mxu1 %v441_v48  ;;  %v439_v52 = vld [vmem:[%s1130_s7 + $0xe8] sm:$0xff] }
  0x33   :  { %356 = vmatpush1.msra.mxu0 %v273_v61  ;;  %v424_v51 = vld [vmem:[%s1130_s7 + $0x70] sm:$0xff]  ;;  %v423_v53 = vld [vmem:[%s1130_s7 + $0x68] sm:$0xff]  ;;  %v438_v54 = vld [vmem:[%s1130_s7 + $0xe0] sm:$0xff] }
  0x34   :  { %357 = vmatprep.subr.mxu0 %v272_v62  ;;  %v422_v55 = vld [vmem:[%s1130_s7 + $0x60] sm:$0xff]  ;;  %v437_v56 = vld [vmem:[%s1130_s7 + $0xd8] sm:$0xff]  ;;  %v436_v58 = vld [vmem:[%s1130_s7 + $0xd0] sm:$0xff] }
  0x35   :  { %358 = vmatpush1.msra.mxu0 %v271_v63  ;;  %v421_v57 = vld [vmem:[%s1130_s7 + $0x58] sm:$0xff]  ;;  %v420_v59 = vld [vmem:[%s1130_s7 + $0x50] sm:$0xff]  ;;  %v435_v60 = vld [vmem:[%s1130_s7 + $0xc8] sm:$0xff] }
  0x36   :  { %359 = vmatprep.subr.mxu0 %v270_v1  ;;  %v419_v61 = vld [vmem:[%s1130_s7 + $0x48] sm:$0xff]  ;;  %v434_v62 = vld [vmem:[%s1130_s7 + $0xc0] sm:$0xff]  ;;  %v433_v1 = vld [vmem:[%s1130_s7 + $0xb8] sm:$0xff] }
  0x37   :  { %360 = vmatpush1.msra.mxu0 %v269_v2  ;;  %v418_v63 = vld [vmem:[%s1130_s7 + $0x40] sm:$0xff]  ;;  %v417_v2 = vld [vmem:[%s1130_s7 + $0x38] sm:$0xff] }
  0x38   :  { %361 = vmatprep.subr.mxu0 %v268_v3  ;;  %v432_v3 = vld [vmem:[%s1130_s7 + $0xb0] sm:$0xff]  ;;  %v626_v48 = vld [vmem:[%s1131_s8] ss:$0 sm:$0xff] }
  0x39   :  { %362 = vmatpush1.msra.mxu0 %v267_v4  ;;  %v416_v4 = vld [vmem:[%s1130_s7 + $0x30] sm:$0xff] }
  0x3a   :  { %363 = vmatprep.subr.mxu0 %v266_v5  ;;  %v431_v5 = vld [vmem:[%s1130_s7 + $0xa8] sm:$0xff] }
  0x3b   :  { %364 = vmatpush1.msra.mxu0 %v265_v6  ;;  %v415_v6 = vld [vmem:[%s1130_s7 + $0x28] sm:$0xff] }
  0x3c   :  { %365 = vmatprep.subr.mxu0 %v264_v7  ;;  %v430_v7 = vld [vmem:[%s1130_s7 + $0xa0] sm:$0xff] }
  0x3d   :  { %366 = vmatpush1.msra.mxu0 %v263_v8  ;;  %v414_v8 = vld [vmem:[%s1130_s7 + $0x20] sm:$0xff] }
  0x3e   :  { %367 = vmatprep.subr.mxu0 %v262_v9  ;;  %v178_v9 = vlaneseq }
  0x3f   :  { %368 = vmatpush1.msra.mxu0 %v261_v10 }
  0x40   :  { %369 = vmatprep.subr.mxu0 %v324_v11  ;;  %v179_v10 = vshrl.u32 %v178_v9, 7 }
  0x41   :  { %370 = vmatpush2.msra.mxu0 %v323_v12  ;;  %v176_v12 = vld [vmem:[%s1127_s4] sm:$0x3] }
  0x42   :  { %371 = vmatprep.subr.mxu0 %v322_v13  ;;  %v180_v11 = vsub.s32 0, %v179_v10  ;;  %v184_v13 = vsub.s32 1, %v179_v10 }
  0x43   :  { %372 = vmatpush2.msra.mxu0 %v321_v14 }
  0x44   :  { %373 = vmatprep.subr.mxu0 %v320_v15  ;;  %v181_v14 = vrot.slane %v176_v12, %v180_v11  ;;  %v185_v15 = vrot.slane %v176_v12, %v184_v13 }
  0x45   :  { %374 = vmatpush2.msra.mxu0 %v319_v16 }
  0x46   :  { %375 = vmatprep.subr.mxu0 %v318_v17 }
  0x47   :  { %376 = vmatpush2.msra.mxu0 %v317_v18 }
  0x48   :  { %377 = vmatprep.subr.mxu0 %v316_v19 }
  0x49   :  { %378 = vmatpush2.msra.mxu0 %v315_v20 }
  0x4a   :  { %379 = vmatprep.subr.mxu0 %v314_v21 }
  0x4b   :  { %380 = vmatpush2.msra.mxu0 %v313_v22  ;;  %v429_v22 = vld [vmem:[%s1130_s7 + $0x98] sm:$0xff] }
  0x4c   :  { %381 = vmatprep.subr.mxu0 %v312_v23  ;;  %v413_v23 = vld [vmem:[%s1130_s7 + $0x18] sm:$0xff] }
  0x4d   :  { %382 = vmatpush2.msra.mxu0 %v311_v24  ;;  %v428_v24 = vld [vmem:[%s1130_s7 + $0x90] sm:$0xff] }
  0x4e   :  { %383 = vmatprep.subr.mxu0 %v310_v25  ;;  %v412_v25 = vld [vmem:[%s1130_s7 + $0x10] sm:$0xff] }
  0x4f   :  { %384 = vmatpush2.msra.mxu0 %v309_v26  ;;  %v427_v26 = vld [vmem:[%s1130_s7 + $0x88] sm:$0xff] }
  0x50   :  { %385 = vmatprep.subr.mxu0 %v308_v27  ;;  %v411_v27 = vld [vmem:[%s1130_s7 + $0x8] sm:$0xff] }
  0x51   :  { %386 = vmatpush2.msra.mxu0 %v307_v28  ;;  %v426_v28 = vld [vmem:[%s1130_s7 + $0x80] sm:$0xff] }
  0x52   :  { %387 = vmatprep.subr.mxu0 %v306_v29  ;;  %v410_v29 = vld [vmem:[%s1130_s7] sm:$0xff] }
  0x53   :  { %388 = vmatpush2.msra.mxu0 %v305_v30  ;;  %v325_v30 = vld [vmem:[%s1129_s6] sm:$0x3] }
  0x54   :  { %389 = vmatprep.subr.mxu0 %v304_v31  ;;  %v330_v31 = vrot.slane %v325_v30, %v180_v11 }
  0x55   :  { %390 = vmatpush2.msra.mxu0 %v303_v32  ;;  %v334_v32 = vrot.slane %v325_v30, %v184_v13 }
  0x56   :  { %391 = vmatprep.subr.mxu0 %v302_v33 }
  0x57   :  { %392 = vmatpush2.msra.mxu0 %v301_v34 }
  0x58   :  { %393 = vmatprep.subr.mxu0 %v300_v40  ;;  %v526_v40 = vld [vmem:[%s1132_s9 + $0x30] sm:$0xff] }
  0x59   :  { %394 = vmatpush2.msra.mxu0 %v299_v41  ;;  %v525_v41 = vld [vmem:[%s1132_s9 + $0x28] sm:$0xff] }
  0x5a   :  { %395 = vmatprep.subr.mxu0 %v298_v42  ;;  %v524_v42 = vld [vmem:[%s1132_s9 + $0x20] sm:$0xff] }
  0x5b   :  { %396 = vmatpush2.msra.mxu0 %v297_v43  ;;  %v523_v43 = vld [vmem:[%s1132_s9 + $0x18] sm:$0xff] }
  0x5c   :  { %397 = vmatprep.subr.mxu0 %v296_v44  ;;  %v522_v44 = vld [vmem:[%s1132_s9 + $0x10] sm:$0xff] }
  0x5d   :  { %398 = vmatpush2.msra.mxu0 %v295_v45  ;;  %v521_v45 = vld [vmem:[%s1132_s9 + $0x8] sm:$0xff] }
  0x5e   :  { %399 = vmatprep.subr.mxu0 %v294_v46  ;;  %v520_v46 = vld [vmem:[%s1132_s9] sm:$0xff] }
  0x5f   :  { %400 = vmatpush2.msra.mxu0 %v293_v47 }
  0xdf   :  { %v139_v36 = vpop.f32.mrf.mxu0 }
  0xe0   :  { %v140_v37 = vadd.f32 %v624_v35, %v139_v36 }
  0xe1   :  { %v700_v38 = vpop.f32.mrf.mxu0 }
  0xe2   :  { %v143_v39 = vmax.f32 %v140_v37, 0.0 }
  0xe4   :  { %253 = vmatmul.mubr.f32.vlgmr.msra.gmra.mxu1 %v143_v39  ;;  %v527_v39 = vld [vmem:[%s1132_s9 + $0x38] sm:$0xff]  ;;  %s746_s9 = scalar_lea.vmem %s616_s13, 32 }
  0xe5   :  { %639 = vmatpush3.msra.mxu1 %v425_v49  ;;  %p747_p5 = scmp.ne.s32.totalorder %s616_s13, %s746_s9  ;;  %p752_p7 = scmp.lt.s32.totalorder %s746_s9, %s746_s9 }
  0xe6   :  { %640 = vmatprep.subr.mxu1 %v440_v50 }
  0xe7   :  { %641 = vmatpush3.msra.mxu1 %v424_v51  ;;  %p753_p8 = por %p752_p7, %p751_p6 }
  0xe8   :  { %642 = vmatprep.subr.mxu1 %v439_v52 }
  0xe9   :  { %643 = vmatpush3.msra.mxu1 %v423_v53  ;;  %p754_p9 = pnand %p753_p8, %p747_p5 }
  0xea   :  { %644 = vmatprep.subr.mxu1 %v438_v54 }
  0xeb   :  { %645 = vmatpush3.msra.mxu1 %v422_v55 }
  0xec   :  { %646 = vmatprep.subr.mxu1 %v437_v56 }
  0xed   :  { %647 = vmatpush3.msra.mxu1 %v421_v57 }
  0xee   :  { %648 = vmatprep.subr.mxu1 %v436_v58 }
  0xef   :  { %649 = vmatpush3.msra.mxu1 %v420_v59 }
  0xf0   :  { %650 = vmatprep.subr.mxu1 %v435_v60 }
  0xf1   :  { %651 = vmatpush3.msra.mxu1 %v419_v61 }
  0xf2   :  { %652 = vmatprep.subr.mxu1 %v434_v62 }
  0xf3   :  { %653 = vmatpush3.msra.mxu1 %v418_v63 }
  0xf4   :  { %654 = vmatprep.subr.mxu1 %v433_v1 }
  0xf5   :  { %655 = vmatpush3.msra.mxu1 %v417_v2 }
  0xf6   :  { %656 = vmatprep.subr.mxu1 %v432_v3 }
  0xf7   :  { %657 = vmatpush3.msra.mxu1 %v416_v4 }
  0xf8   :  { %658 = vmatprep.subr.mxu1 %v431_v5 }
  0xf9   :  { %659 = vmatpush3.msra.mxu1 %v415_v6 }
  0xfa   :  { %660 = vmatprep.subr.mxu1 %v430_v7 }
  0xfb   :  { %661 = vmatpush3.msra.mxu1 %v414_v8 }
  0xfc   :  { %662 = vmatprep.subr.mxu1 %v429_v22 }
  0xfd   :  { %663 = vmatpush3.msra.mxu1 %v413_v23 }
  0xfe   :  { %664 = vmatprep.subr.mxu1 %v428_v24 }
  0xff   :  { %665 = vmatpush3.msra.mxu1 %v412_v25 }
 0x100   :  { %666 = vmatprep.subr.mxu1 %v427_v26 }
 0x101   :  { %667 = vmatpush3.msra.mxu1 %v411_v27 }
 0x102   :  { %668 = vmatprep.subr.mxu1 %v426_v28 }
 0x103   :  { %669 = vmatpush3.msra.mxu1 %v410_v29 }
 0x104   :  { %701 = vmatprep.subr.mxu1 %v773_v0 }
 0x1a4   :  { %v254_v16 = vpop.f32.mrf.mxu1 }
 0x1a5   :  { %v255_v17 = vadd.f32 %v254_v16, %v181_v14 }
 0x1a6   :  { %v256_v18 = vpop.f32.mrf.mxu1 }
 0x1a7   :  { %v257_v19 = vadd.f32 %v256_v18, %v185_v15  ;;  %v259_v21 = vmax.f32 %v255_v17, 0.0 }
 0x1a9   :  { %v260_v20 = vmax.f32 %v257_v19, 0.0 }
 0x1ab   :  { %401 = vmatprep.mubr.f32.mxu0 %v260_v20 }
 0x1ac   :  { %402 = vmatmul.mubr.f32.vlgmr.msra.gmra.mxu0 %v259_v21 }
 0x26c   :  { %v403_v33 = vpop.f32.mrf.mxu0 }
 0x26d   :  { %v404_v34 = vadd.f32 %v403_v33, %v330_v31 }
 0x26e   :  { %v405_v35 = vpop.f32.mrf.mxu0 }
 0x26f   :  { %v406_v36 = vadd.f32 %v405_v35, %v334_v32  ;;  %v408_v38 = vmax.f32 %v404_v34, 0.0 }
 0x271   :  { %v409_v37 = vmax.f32 %v406_v36, 0.0 }
 0x273   :  { %513 = vmatprep.mubr.f32.mxu1 %v409_v37 }
 0x274   :  { %514 = vmatmul.mubr.f32.vlgmr.msra.gmra.mxu1 %v408_v38 }
 0x275   :  { %702 = vmatpush3.msra.mxu1 %v527_v39  ;;  %717 = vmatprep.mubr.msk.f32.mxu1 %vm774_vm0, %v773_v0 }
 0x276   :  { %703 = vmatprep.subr.mxu1 %v773_v0 }
 0x277   :  { %704 = vmatpush3.msra.mxu1 %v526_v40 }
 0x278   :  { %705 = vmatprep.subr.mxu1 %v773_v0 }
 0x279   :  { %706 = vmatpush3.msra.mxu1 %v525_v41 }
 0x27a   :  { %707 = vmatprep.subr.mxu1 %v773_v0 }
 0x27b   :  { %708 = vmatpush3.msra.mxu1 %v524_v42 }
 0x27c   :  { %709 = vmatprep.subr.mxu1 %v773_v0 }
 0x27d   :  { %710 = vmatpush3.msra.mxu1 %v523_v43 }
 0x27e   :  { %711 = vmatprep.subr.mxu1 %v773_v0 }
 0x27f   :  { %712 = vmatpush3.msra.mxu1 %v522_v44 }
 0x280   :  { %713 = vmatprep.subr.mxu1 %v773_v0 }
 0x281   :  { %714 = vmatpush3.msra.mxu1 %v521_v45 }
 0x282   :  { %715 = vmatprep.subr.mxu1 %v773_v0  ;;  %v627_v0 = vld [vmem:[%s1133_s10] ss:$0 sm:$0xff] }
 0x283   :  { %716 = vmatpush3.msra.mxu1 %v520_v46 }
 0x334   :  { %v670_v47 = vpop.f32.mrf.mxu1 }
 0x336   :  { %v671_v49 = vpop.f32.mrf.mxu1 }
 0x337   :  { %v672_v50 = vadd.f32 %v671_v49, %v670_v47 }
 0x339   :  { %v516_v51 = vadd.f32 %v672_v50, %v626_v48 }
 0x33b   :  { %v519_v52 = vmax.f32 %v516_v51, 0.0 }
 0x33d   :  { %718 = vmatmul.mubr.msk.f32.vlgmr.msra.gmra.mxu1 %vm69_vm1, %v519_v52 }
 0x3fd   :  { %v604_v53 = vpop.f32.mrf.mxu1 }
 0x3fe   :  { %v605_v54 = vadd.f32 %v627_v0, %v604_v53 }
 0x3ff   :  { %v719_v55 = vpop.f32.mrf.mxu1 }
 0x400   :  { %608 = vst [vmem:[#allocation5] sm:$0x3] %v605_v54 }
 0x401   :  { %757 = shalt.err (!%p754_p9)
}
 0x402   :  { %618 = dma.vmem_to_hbm [thread:$0]  %s616_s13, 32, %s1134_s11, [#allocation4]  }
 0x403   :  { %768 = dma.done.wait [#allocation4], 32  }
 0x404   :  { %769 = vsyncadd [#allocation4], 4294967264 }
 0x405   :  { %622 = vsyncpa [#allocation3], 1 }
 0x406   :  { %623 = vsyncpa [#allocation4], 1 }

</bundles_post_ra>
